<compile_context>
chip_gen: v7x
topology: tpu7x:2x2x1
jax: 0.10.0
libtpu: 0.0.40
codegen_flags: <defaults>
</compile_context>

<pallas_src>
import functools

import jax
import jax.numpy as jnp
from jax.experimental import pallas as pl
from jax.experimental.pallas import tpu as pltpu


def _transition_kernel(x_ref, scale_ref, shift_ref, w_ref, o_ref):
    # x_ref:     (1, tho, 2, Wo, 2*Cin)  rows grouped as (out_row, 2); width
    #                                    pairs merged into the lane axis with
    #                                    lane index = dw * Cin + c.
    # scale_ref: (1, 2*Cin) f32          gamma / sqrt(var + eps), repeated x2
    # shift_ref: (1, 2*Cin) f32          beta - mean * scale,     repeated x2
    # w_ref:     (Cin, Cout_pad)         0.25 * conv1x1 weight^T (I/O dtype)
    # o_ref:     (1, tho, Wo, Cout_pad)
    tho, wo, cout = o_ref.shape[1], o_ref.shape[2], o_ref.shape[3]
    cin = x_ref.shape[4] // 2

    scale = scale_ref[...]                               # (1, 2*Cin)
    shift = shift_ref[...]

    v = x_ref[...][0]                                    # (tho, 2, Wo, 2*Cin)
    # BN + ReLU in f32 (x stays narrow in HBM, upcast per tile).
    # TODO(synk): on v6e/v7x a bf16 VALU path would double elementwise
    # throughput; kept f32 here for accuracy and v5e portability.
    y = jnp.maximum(v.astype(jnp.float32) * scale + shift, 0.0)

    # 2x2 / stride-2 sum pool: row pair via the static size-2 axis, width pair
    # via the two Cin-wide halves of the merged lane axis.  The 1/4 factor is
    # folded into the conv weight in the wrapper.
    rows = y[:, 0] + y[:, 1]                             # (tho, Wo, 2*Cin)
    pooled = rows[..., :cin] + rows[..., cin:]           # (tho, Wo, Cin)

    z = jnp.dot(pooled.reshape(tho * wo, cin).astype(w_ref.dtype), w_ref[...],
                preferred_element_type=jnp.float32)      # (tho*Wo, Cout_pad)
    o_ref[...] = z.reshape(1, tho, wo, cout).astype(o_ref.dtype)


def _round_up(x, m):
    return (x + m - 1) // m * m


def _vmem_budget_bytes():
    """(working-set budget, scoped-VMEM limit) derived from the chip's VMEM."""
    try:
        cap = int(pltpu.get_tpu_info().vmem_capacity_bytes)
    except Exception:  # no TPU visible (e.g. interpret mode) -> conservative
        cap = 64 * 1024 * 1024
    budget = min(cap // 3, 40 * 1024 * 1024)            # v7x: ~21 MiB, v5e/v6e: 40 MiB
    limit = min(cap * 3 // 4, 100 * 1024 * 1024)        # never ask near physical
    return budget, limit


def _per_step_vmem_bytes(t, Wo, Cin, Cout_pad, io_itemsize):
    """Estimated VMEM for one pipelined grid step with tho = t output rows."""
    m = t * Wo
    return (2 * t * 2 * Wo * 2 * Cin * io_itemsize       # x tile, double-buffered
            + 2 * t * Wo * Cout_pad * io_itemsize        # out tile, double-buffered
            + 2 * Cin * Cout_pad * io_itemsize           # weight buffers
            + 2 * 2 * 2 * Cin * 4                        # scale / shift
            + m * (2 * Cin + Cin + Cout_pad) * 4)        # bn/pool/acc f32 intermediates


def _pick_out_row_tile(N, Ho, Wo, Cin, Cout_pad, io_itemsize, budget_bytes):
    """Output rows per grid step: largest divisor of Ho that fits the VMEM
    budget, preferring (a) >= 8 total grid steps (pipeline depth + both v7x
    TensorCores fed even at batch 1), (b) sublane-aligned matmul M = tho*Wo,
    (c) M >= 256 to fill the MXU rows, then (d) the biggest tile."""
    divisors = [t for t in range(1, Ho + 1) if Ho % t == 0]
    fitting = [t for t in divisors
               if _per_step_vmem_bytes(t, Wo, Cin, Cout_pad, io_itemsize)
               <= budget_bytes] or divisors[:1]

    def score(t):
        m = t * Wo
        return (N * (Ho // t) >= 8, m % 8 == 0, m >= 256, t)

    return max(fitting, key=score)


@functools.partial(jax.jit, static_argnames=("eps", "block_out_rows"))
def transition_forward_nhwc(x_nhwc, gamma, beta, running_mean, running_var,
                            conv_w, eps=1e-5, block_out_rows=None):
    """NHWC fast path.  x_nhwc: (N, H, W, Cin) in its native dtype (f32/bf16).
    conv_w: (Cout, Cin, 1, 1) torch layout.  Returns (N, H//2, W//2, Cout) in
    the input dtype.  Eval-mode BN (running statistics)."""
    N, H, W, Cin = x_nhwc.shape
    Cout = conv_w.shape[0]
    assert H % 2 == 0 and W % 2 == 0, "avg_pool2d(2) tiling assumes even H, W"
    Ho, Wo = H // 2, W // 2
    io_dtype = x_nhwc.dtype
    io_itemsize = jnp.dtype(io_dtype).itemsize

    # Fold eval-mode BN into per-channel scale/shift (kept in f32).
    # TODO(synk): training-mode BN (batch stats + running-stat update) is not
    # implemented; this matches module.eval() semantics only.
    inv_std = jax.lax.rsqrt(running_var.astype(jnp.float32) + eps)
    scale = gamma.astype(jnp.float32) * inv_std
    shift = beta.astype(jnp.float32) - running_mean.astype(jnp.float32) * scale
    # Width pairs are merged into the lane axis -> repeat the BN vectors.
    scale2 = jnp.concatenate([scale, scale]).reshape(1, 2 * Cin)
    shift2 = jnp.concatenate([shift, shift]).reshape(1, 2 * Cin)

    # 1x1 conv weight -> (Cin, Cout_pad) in the I/O dtype with the 0.25
    # average-pool factor folded in.  Pad only when Cout isn't lane-dense.
    Cout_pad = Cout if Cout % 128 == 0 else _round_up(Cout, 128)
    w = (conv_w.reshape(Cout, Cin).T.astype(jnp.float32) * 0.25).astype(io_dtype)
    if Cout_pad != Cout:
        # NOTE: for tiny Cout this padding amplifies output writeback.
        w = jnp.pad(w, ((0, 0), (0, Cout_pad - Cout)))

    budget, limit_cap = _vmem_budget_bytes()
    if block_out_rows is None:
        tho = _pick_out_row_tile(N, Ho, Wo, Cin, Cout_pad, io_itemsize, budget)
    else:
        tho = block_out_rows
    assert tho >= 1 and Ho % tho == 0
    est = _per_step_vmem_bytes(tho, Wo, Cin, Cout_pad, io_itemsize)
    vmem_limit_bytes = int(min(max(32 * 1024 * 1024, est * 3 // 2), limit_cap))

    # Group rows into (out_row, 2) pairs and merge the width pair into the
    # channel (lane) axis; contiguous => free reshape, no dtype change.
    x = x_nhwc.reshape(N, Ho, 2, Wo, 2 * Cin)

    out = pl.pallas_call(
        _transition_kernel,
        out_shape=jax.ShapeDtypeStruct((N, Ho, Wo, Cout_pad), io_dtype),
        grid_spec=pltpu.PrefetchScalarGridSpec(
            num_scalar_prefetch=0,
            grid=(N, Ho // tho),
            in_specs=[
                pl.BlockSpec((1, tho, 2, Wo, 2 * Cin),
                             lambda n, r: (n, r, 0, 0, 0)),
                pl.BlockSpec((1, 2 * Cin), lambda n, r: (0, 0)),
                pl.BlockSpec((1, 2 * Cin), lambda n, r: (0, 0)),
                pl.BlockSpec((Cin, Cout_pad), lambda n, r: (0, 0)),
            ],
            out_specs=pl.BlockSpec((1, tho, Wo, Cout_pad),
                                   lambda n, r: (n, r, 0, 0)),
        ),
        compiler_params=pltpu.CompilerParams(
            dimension_semantics=("parallel", "parallel"),
            vmem_limit_bytes=vmem_limit_bytes),
        cost_estimate=pl.CostEstimate(
            flops=2 * N * Ho * Wo * Cin * Cout_pad + 6 * N * H * W * Cin,
            transcendentals=0,
            bytes_accessed=io_itemsize * (N * H * W * Cin
                                          + N * Ho * Wo * Cout_pad
                                          + Cin * Cout_pad) + 4 * 4 * Cin),
    )(x, scale2, shift2, w)

    if Cout_pad != Cout:
        out = out[..., :Cout]
    return out


@functools.partial(jax.jit, static_argnames=("eps",))
def transition_forward(x_nchw, gamma, beta, running_mean, running_var, conv_w,
                       eps=1e-5):
    """NCHW compatibility wrapper matching the PyTorch module's layout.
    For performance keep activations NHWC and call transition_forward_nhwc
    directly (avoids two extra HBM round trips for the transposes)."""
    x_nhwc = jnp.transpose(x_nchw, (0, 2, 3, 1))
    out_nhwc = transition_forward_nhwc(x_nhwc, gamma, beta, running_mean,
                                       running_var, conv_w, eps=eps)
    return jnp.transpose(out_nhwc, (0, 3, 1, 2))


def _reference(x_nchw, gamma, beta, mean, var, conv_w, eps=1e-5):
    # Pure-JAX reference mirroring the PyTorch forward (eval-mode BN).
    xn = (x_nchw - mean[None, :, None, None]) / jnp.sqrt(var[None, :, None, None] + eps)
    xn = xn * gamma[None, :, None, None] + beta[None, :, None, None]
    y = jnp.maximum(xn, 0.0)
    z = jnp.einsum("nchw,oc->nohw", y,
                   conv_w.reshape(conv_w.shape[0], conv_w.shape[1]))
    N, Co, H, W = z.shape
    z = z.reshape(N, Co, H // 2, 2, W // 2, 2)
    return z.mean(axis=(3, 5))


if __name__ == "__main__":
    key = jax.random.PRNGKey(0)
    N, Cin, H, W = 2, 4, 16, 16
    Cout = 8

    k1, k2, k3, k4, k5, k6 = jax.random.split(key, 6)
    x = jax.random.normal(k1, (N, Cin, H, W), jnp.float32)
    gamma = jax.random.normal(k2, (Cin,), jnp.float32) * 0.1 + 1.0
    beta = jax.random.normal(k3, (Cin,), jnp.float32) * 0.1
    running_mean = jax.random.normal(k4, (Cin,), jnp.float32) * 0.1
    running_var = jax.random.uniform(k5, (Cin,), jnp.float32, 0.5, 1.5)
    # Kaiming-ish init for the 1x1 conv weight (torch layout: Cout, Cin, 1, 1).
    conv_w = jax.random.normal(k6, (Cout, Cin, 1, 1), jnp.float32) * (2.0 / Cin) ** 0.5

    out = transition_forward(x, gamma, beta, running_mean, running_var, conv_w)
    out = jax.block_until_ready(out)

    ref = _reference(x, gamma, beta, running_mean, running_var, conv_w)
    assert out.shape == (N, Cout, H // 2, W // 2), out.shape
    err = float(jnp.max(jnp.abs(out - ref)))
    assert jnp.allclose(out, ref, atol=2e-4, rtol=2e-4), err

    print("KERNEL_OK")
</pallas_src>

<mosaic_0001>
module attributes {stable_mosaic.version = 11 : i64} {
  func.func @_transition_kernel(%arg0: i32, %arg1: i32, %arg2: memref<1x2x2x8x8xf32, #tpu.memory_space<vmem>>, %arg3: memref<1x8xf32, #tpu.memory_space<vmem>>, %arg4: memref<1x8xf32, #tpu.memory_space<vmem>>, %arg5: memref<4x128xf32, #tpu.memory_space<vmem>>, %arg6: memref<1x2x8x128xf32, #tpu.memory_space<vmem>>) attributes {dimension_semantics = [#tpu.dimension_semantics<parallel>, #tpu.dimension_semantics<parallel>], iteration_bounds = array<i64: 2, 4>, scalar_prefetch = 0 : i64, scratch_operands = 0 : i64, tpu.core_type = #tpu.core_type<tc>, window_params = [{transform_indices = @transform_0, window_bounds = array<i64: 1, 2, 2, 8, 8>}, {pipeline_mode = #tpu.pipeline_mode<synchronous>, transform_indices = @transform_1, window_bounds = array<i64: 1, 8>}, {pipeline_mode = #tpu.pipeline_mode<synchronous>, transform_indices = @transform_2, window_bounds = array<i64: 1, 8>}, {pipeline_mode = #tpu.pipeline_mode<synchronous>, transform_indices = @transform_3, window_bounds = array<i64: 4, 128>}, {transform_indices = @transform_4, window_bounds = array<i64: 1, 2, 8, 128>}]} {
    %c0 = arith.constant 0 : index
    %c0_0 = arith.constant 0 : index
    %0 = vector.load %arg3[%c0, %c0_0] : memref<1x8xf32, #tpu.memory_space<vmem>>, vector<1x8xf32>
    %c0_1 = arith.constant 0 : index
    %c0_2 = arith.constant 0 : index
    %1 = vector.load %arg4[%c0_1, %c0_2] : memref<1x8xf32, #tpu.memory_space<vmem>>, vector<1x8xf32>
    %c0_3 = arith.constant 0 : index
    %c0_4 = arith.constant 0 : index
    %c0_5 = arith.constant 0 : index
    %c0_6 = arith.constant 0 : index
    %c0_7 = arith.constant 0 : index
    %2 = vector.load %arg2[%c0_3, %c0_4, %c0_5, %c0_6, %c0_7] : memref<1x2x2x8x8xf32, #tpu.memory_space<vmem>>, vector<1x2x2x8x8xf32>
    %3 = vector.shape_cast %2 : vector<1x2x2x8x8xf32> to vector<2x2x8x8xf32>
    %4 = vector.shape_cast %0 : vector<1x8xf32> to vector<1x1x1x8xf32>
    %5 = vector.broadcast %4 : vector<1x1x1x8xf32> to vector<2x2x8x8xf32>
    %6 = arith.mulf %3, %5 : vector<2x2x8x8xf32>
    %7 = vector.shape_cast %1 : vector<1x8xf32> to vector<1x1x1x8xf32>
    %8 = vector.broadcast %7 : vector<1x1x1x8xf32> to vector<2x2x8x8xf32>
    %9 = arith.addf %6, %8 : vector<2x2x8x8xf32>
    %cst = arith.constant 0.000000e+00 : f32
    %10 = vector.broadcast %cst : f32 to vector<2x2x8x8xf32>
    %11 = arith.maximumf %9, %10 : vector<2x2x8x8xf32>
    %12 = vector.extract_strided_slice %11 {offsets = [0, 0, 0, 0], sizes = [2, 1, 8, 8], strides = [1, 1, 1, 1]} : vector<2x2x8x8xf32> to vector<2x1x8x8xf32>
    %13 = vector.shape_cast %12 : vector<2x1x8x8xf32> to vector<2x8x8xf32>
    %14 = vector.extract_strided_slice %11 {offsets = [0, 1, 0, 0], sizes = [2, 1, 8, 8], strides = [1, 1, 1, 1]} : vector<2x2x8x8xf32> to vector<2x1x8x8xf32>
    %15 = vector.shape_cast %14 : vector<2x1x8x8xf32> to vector<2x8x8xf32>
    %16 = arith.addf %13, %15 : vector<2x8x8xf32>
    %17 = vector.extract_strided_slice %16 {offsets = [0, 0, 0], sizes = [2, 8, 4], strides = [1, 1, 1]} : vector<2x8x8xf32> to vector<2x8x4xf32>
    %18 = vector.extract_strided_slice %16 {offsets = [0, 0, 4], sizes = [2, 8, 4], strides = [1, 1, 1]} : vector<2x8x8xf32> to vector<2x8x4xf32>
    %19 = arith.addf %17, %18 : vector<2x8x4xf32>
    %20 = vector.shape_cast %19 : vector<2x8x4xf32> to vector<16x4xf32>
    %c0_8 = arith.constant 0 : index
    %c0_9 = arith.constant 0 : index
    %21 = vector.load %arg5[%c0_8, %c0_9] : memref<4x128xf32, #tpu.memory_space<vmem>>, vector<4x128xf32>
    %cst_10 = arith.constant dense<0.000000e+00> : vector<16x128xf32>
    %22 = tpu.matmul %20, %21, %cst_10 {dimension_numbers = #tpu.dot_dimension_numbers<[1], [0], [0], [1], [0, 0, 1, 1], [], []>} : vector<16x4xf32>, vector<4x128xf32>, vector<16x128xf32> -> vector<16x128xf32>
    %23 = vector.shape_cast %22 : vector<16x128xf32> to vector<1x2x8x128xf32>
    %c0_11 = arith.constant 0 : index
    %c0_12 = arith.constant 0 : index
    %c0_13 = arith.constant 0 : index
    %c0_14 = arith.constant 0 : index
    %24 = vector.load %arg6[%c0_11, %c0_12, %c0_13, %c0_14] : memref<1x2x8x128xf32, #tpu.memory_space<vmem>>, vector<1x2x8x128xf32>
    tpu.vector_store %arg6[%c0_11, %c0_12, %c0_13, %c0_14], %23 {strides = array<i32>} : memref<1x2x8x128xf32, #tpu.memory_space<vmem>>, vector<1x2x8x128xf32>,
    return
  }
  func.func @transform_0(%arg0: i32, %arg1: i32) -> (i32, i32, i32, i32, i32) {
    %c0_i32 = arith.constant 0 : i32
    %c0_i32_0 = arith.constant 0 : i32
    %c0_i32_1 = arith.constant 0 : i32
    %c0_i32_2 = arith.constant 0 : i32
    return %arg0, %arg1, %c0_i32, %c0_i32_0, %c0_i32_1 : i32, i32, i32, i32, i32
  }
  func.func @transform_1(%arg0: i32, %arg1: i32) -> (i32, i32) {
    %c0_i32 = arith.constant 0 : i32
    %c0_i32_0 = arith.constant 0 : i32
    %c0_i32_1 = arith.constant 0 : i32
    return %c0_i32, %c0_i32_0 : i32, i32
  }
  func.func @transform_2(%arg0: i32, %arg1: i32) -> (i32, i32) {
    %c0_i32 = arith.constant 0 : i32
    %c0_i32_0 = arith.constant 0 : i32
    %c0_i32_1 = arith.constant 0 : i32
    return %c0_i32, %c0_i32_0 : i32, i32
  }
  func.func @transform_3(%arg0: i32, %arg1: i32) -> (i32, i32) {
    %c0_i32 = arith.constant 0 : i32
    %c0_i32_0 = arith.constant 0 : i32
    %c0_i32_1 = arith.constant 0 : i32
    return %c0_i32, %c0_i32_0 : i32, i32
  }
  func.func @transform_4(%arg0: i32, %arg1: i32) -> (i32, i32, i32, i32) {
    %c0_i32 = arith.constant 0 : i32
    %c0_i32_0 = arith.constant 0 : i32
    %c0_i32_1 = arith.constant 0 : i32
    return %arg0, %arg1, %c0_i32, %c0_i32_0 : i32, i32, i32, i32
  }
}

</mosaic_0001>

<bundles_post_ra>
// kernel: transition_forward_nhwc.1
= control target key start
LH: loop header
LB: loop body
LE: loop exit
PB: predicated region body
PF: predicated region fallthrough
CT: control target
= control target key end

     0   :  { %9 = vsyncpa [#allocation3], 0  ;;  %s842_s0 = inlined_call_operand.vmem [shape: f32[2,8,2,8,8], index: 0, kind: input, shape index: {}]   ;;  %s843_s1 = inlined_call_operand.vmem [shape: f32[1,8], index: 1, kind: input, shape index: {}]   ;;  %s844_s2 = inlined_call_operand.vmem [shape: f32[1,8], index: 2, kind: input, shape index: {}]   ;;  %s845_s3 = inlined_call_operand.vmem [shape: f32[4,128], index: 3, kind: input, shape index: {}]   ;;  %s846_s4 = inlined_call_operand.hbm [shape: f32[2,8,8,128], index: 4, kind: output, shape index: {}]  }
   0x1   :  { %11 = vsyncpa [#allocation3 + $0x1], 0  ;;  %s690_s15 = smov 0   ;;  %s692_s16 = smov 0  }
   0x2   :  { %s694_s17 = smov 0   ;;  %s696_s18 = smov 0  }
   0x3   :  { %s698_s19 = smov 0   ;;  %s700_s20 = smov 0  }
   0x4   :  { %s702_s21 = smov 0   ;;  %s704_s22 = smov 0  }
   0x5 LB: > { %s462_s23 = sadd.s32 4294967295, %s659_s22   ;;  %s463_s24 = sadd.s32 4294967294, %s659_s22   ;;  %s659_s22 = sphi %s704_s22, %s17_s22   ;;  %s655_s21 = sphi %s702_s21, %s861_s21   ;;  %s651_s20 = sphi %s700_s20, %s860_s20   ;;  %s647_s19 = sphi %s698_s19, %s859_s19   ;;  %s643_s18 = sphi %s696_s18, %s858_s18   ;;  %s639_s17 = sphi %s694_s17, %s857_s17   ;;  %s635_s16 = sphi %s692_s16, %s856_s16   ;;  %s631_s15 = sphi %s690_s15, %s855_s15  }
   0x6   : > { %s26_s25 = sadd.s32 1, %s651_s20  ;;  %s29_s26 = sadd.s32 1, %s655_s21 }
   0x7   : > { %p27_p0 = scmp.ge.s32.totalorder %s26_s25, 4  ;;  %p139_p1 = scmp.ne.s32.totalorder %s639_s17, %s635_s16 }
   0x8   : > { %p140_p2 = scmp.eq.s32.totalorder %s462_s23, 7  ;;  %p145_p5 = scmp.ne.s32.totalorder %s635_s16, %s631_s15 }
   0x9   : > { %s863_s25 = smov (%p27_p0, %s26_s25), 0  ;;  %s865_s26 = smov (!%p27_p0, %s29_s26), %s655_s21 }
   0xa   : > { %849 = sst [smem:[#allocation5_spill]] %s863_s25  ;;  %s125_s27 = ssub.s32 %s651_s20, %s863_s25 }
   0xb   : > { %p741_p3 = por %p140_p2, %p139_p1  ;;  %p31_p4 = scmp.ge.s32.totalorder %s865_s26, 2 }
   0xc   : > { %p146_p6 = scmp.eq.s32.totalorder %s463_s24, 7  ;;  %p466_p7 = scmp.ge.s32.totalorder %s659_s22, 1 }
   0xd   : > { %s867_s26 = smov (%p31_p4, %s865_s26), 0  ;;  %p187_p9 = scmp.lt.s32.totalorder %s659_s22, 9 }
   0xe   : > { %851 = sst [smem:[#allocation6_spill]] %s867_s26  ;;  %p750_p8 = por %p146_p6, %p145_p5 }
   0xf   : > { %s124_s30 = ssub.s32 %s655_s21, %s867_s26  ;;  %s129_s5 = sadd.s32 1, %s639_s17 }
  0x10   : > { %s126_s6 = sor.u32 %s125_s27, %s124_s30  ;;  %p188_p10 = pnand %p466_p7, %p187_p9 }
  0x11   : > { %p127_p11 = scmp.eq.s32.totalorder %s126_s6, 0  ;;  %s762_s8 = sshll.u32 (!%p188_p10), %s643_s18, 1  ;;  %v472_v0 = vld [vmem:[%s843_s1] ss:$0 sm:$0xff] (!%p188_p10)  ;;  %vm280_vm0 = vcmask (!%p188_p10), 1043456   ;;  %vm273_vm1 = vcmask (!%p188_p10), 31744  }
  0x12   : > { %191 = sbr.rel (%p188_p10) target bundleno = 390 (0x186), region = 36  ;;  %p219_p12 = scmp.lt.s32.totalorder (!%p188_p10), %s647_s19, 1  ;;  %v473_v1 = vld [vmem:[%s844_s2] ss:$0 sm:$0xff] (!%p188_p10) }
  0x13   : > { %s759_s7 = scalar_select %p127_p11, %s639_s17, %s129_s5  }
  0x14   : > { %p221_p13 = scmp.lt.s32.totalorder (!%p188_p10), %s762_s8, 7  ;;  %v272_v2 = vld [vmem:[%s845_s3] sm:$0xf] (!%p188_p10)  ;;  %s661_s25 = smov (!%p188_p10), 124  }
  0x15   : > { %486 = vmatprep.subr.msk.mxu0 (!%p188_p10), %vm280_vm0, %v272_v2  ;;  %s215_s26 = sand.u32 (!%p188_p10), 1, %s635_s16  }
  0x16   : > { %487 = vmatpush3.msk.msra.mxu0 (!%p188_p10), %vm280_vm0, %v272_v2  ;;  %s790_s30 = scalar_lea.sflag (!%p188_p10), [#allocation3], %s215_s26 }
  0x19   : > { %s220_s9 = scalar_select %p219_p12, %s647_s19, 1 }
  0x1a   : > { %s222_s10 = scalar_select %p221_p13, %s762_s8, 7 }
  0x1b   : > { %s470_s11 = sshll.u32 %s220_s9, 4  ;;  %s467_s9 = sshll.u32 %s215_s26, 4 }
  0x1c   : > { %s469_s12 = sshll.u32 %s222_s10, 1  ;;  %s479_s10 = sshll.u32 %s647_s19, 3 }
  0x1d   : > { %s225_s13 = sadd.s32 %s470_s11, %s469_s12  ;;  %s374_s11 = sadd.s32 %s479_s10, %s762_s8 }
  0x1e   : > { %s471_s14 = sshll.u32 %s225_s13, 3  ;;  %s217_s12 = scalar_lea.vmem [#allocation2], %s467_s9 }
  0x1f   : > { %s227_s5 = scalar_lea.vmem %s842_s0, %s471_s14  ;;  %s377_s13 = sshll.u32 %s217_s12, 4  ;;  %s783_s13 = int_to_ptr.vmem [resolvable:$true] %s377_s13 }
  0x20   : > { %v232_v3 = vld [vmem:[%s227_s5] sm:$0xff]  ;;  %v233_v4 = vld [vmem:[%s227_s5 + $0x8] sm:$0xff]  ;;  %v234_v5 = vld [vmem:[%s227_s5 + $0x10] sm:$0xff]  ;;  %s480_s14 = sshll.u32 %s374_s11, 7  ;;  %s565_s19 = scalar_lea.vmem %s783_s13, 256 }
  0x21   : > { %v242_v6 = vmul.f32 %v472_v0, %v232_v3  ;;  %v243_v7 = vmul.f32 %v472_v0, %v233_v4  ;;  %v235_v8 = vld [vmem:[%s227_s5 + $0x18] sm:$0xff]  ;;  %v244_v9 = vmul.f32 %v472_v0, %v234_v5  ;;  %s788_s27 = scalar_lea.hbm %s846_s4, %s480_s14  ;;  %p566_p0 = scmp.ne.s32.totalorder %s783_s13, %s565_s19 }
  0x22   : > { %v245_v10 = vmul.f32 %v472_v0, %v235_v8  ;;  %s662_s8 = smov [#allocation2]  }
  0x23   : > { %v252_v11 = vadd.f32 %v473_v1, %v242_v6  ;;  %v253_v12 = vadd.f32 %v473_v1, %v243_v7  ;;  %v254_v13 = vadd.f32 %v473_v1, %v244_v9  ;;  %p567_p1 = pnand %p566_p0, %p741_p3  ;;  %s569_s5 = sshll.u32 %s662_s8, 4  ;;  %s570_s5 = int_to_ptr.vmem [resolvable:$false] %s569_s5 }
  0x24   : > { %v255_v14 = vadd.f32 %v473_v1, %v245_v10  ;;  %s571_s18 = scalar_lea.vmem %s570_s5, 512  ;;  %p572_p4 = scmp.lt.s32.totalorder %s783_s13, %s570_s5 }
  0x25   : > { %v256_v15 = vmax.f32 %v252_v11, 0.0  ;;  %v257_v16 = vmax.f32 %v253_v12, 0.0  ;;  %v258_v17 = vmax.f32 %v254_v13, 0.0  ;;  %p568_p2 = pneg %p567_p1  ;;  %p573_p5 = scmp.lt.s32.totalorder %s571_s18, %s565_s19 }
  0x26   : > { %v259_v18 = vmax.f32 %v255_v14, 0.0 }
  0x27   : > { %v260_v19 = vadd.f32 %v257_v16, %v256_v15  ;;  %p574_p6 = por %p573_p5, %p572_p4 }
  0x28   : > { %v261_v20 = vadd.f32 %v259_v18, %v258_v17 }
  0x29   : > { %264 = vrot.lane.b32.xlu0 %v260_v19, %s661_s25  ;;  %p575_p7 = pnand %p574_p6, %p568_p2 }
  0x2d   : > { %266 = vrot.lane.b32.xlu0 %v261_v20, %s661_s25 }
  0x9b   : > { %v265_v21 = vpop.permute.xlu0 %264 }
  0x9c   : > { %v270_v22 = vadd.f32 %v265_v21, %v260_v19 }
  0x9e   : > { %488 = vmatprep.mubr.msk.f32.mxu0 %vm273_vm1, %v270_v22 }
  0x9f   : > { %v267_v23 = vpop.permute.xlu0 %266 }
  0xa0   : > { %v271_v24 = vadd.f32 %v267_v23, %v261_v20 }
  0xa2   : > { %489 = vmatmul.mubr.msk.f32.vlgmr.msra.gmra.mrb[0].mxu0 %vm273_vm1, %v271_v24 }
 0x175   : > { %v490_v25 = vpop.f32.mrb[0].mxu0 }
 0x176   : > { %360 = vst [vmem:[%s217_s12 + $0x8] sm:$0xff] %v490_v25  ;;  %v350_v26 = vpop.f32.mrb[1].mxu0 }
 0x177   : > { %359 = vst [vmem:[%s217_s12] sm:$0xff] %v350_v26 }
 0x178   : > { %578 = shalt.err (!%p575_p7)
}
 0x179   : > { %s579_s6 = scalar_lea.hbm %s788_s27, 256  ;;  %s583_s9 = scalar_lea.hbm %s846_s4, 2048 }
 0x17a   : > { %p580_p9 = scmp.ne.s32.totalorder %s788_s27, %s579_s6  ;;  %p584_p12 = scmp.lt.u32.totalorder %s788_s27, %s846_s4 }
 0x17b   : > { %p585_p13 = scmp.lt.u32.totalorder %s583_s9, %s579_s6  ;;  %p587_p1 = scmp.lt.u32.totalorder %s579_s6, %s788_s27 }
 0x17c   : > { %p581_p10 = pnand %p580_p9, %p741_p3 }
 0x17d   : > { %p586_p0 = por %p585_p13, %p584_p12 }
 0x17e   : > { %p582_p11 = pneg %p581_p10 }
 0x17f   : > { %p588_p2 = por %p587_p1, %p586_p0 }
 0x181   : > { %p589_p4 = pnand %p588_p2, %p582_p11 }
 0x183   : > { %592 = shalt.err (!%p589_p4)
}
 0x184   : > { %s663_s12 = smov 128   ;;  %s664_s14 = smov 8  }
 0x185   : > { %491 = dma.vmem_to_hbm [thread:$0]  (%p741_p3), %s783_s13, 256, %s788_s27, %s790_s30, %s663_s12, %s663_s12, %s664_s14  }
 0x186 PF: > { %p497_p5 = scmp.ge.s32.totalorder %s659_s22, 2  ;;  %s392_s23 = sand.u32 1, %s631_s15  }
 0x187   : > { %s393_s24 = scalar_lea.sflag [#allocation3], %s392_s23 }
 0x188   : > { %p494_p6 = pnand %p497_p5, %p750_p8 }
 0x18a   : > { %626 = dma.done.wait (!%p494_p6), %s393_s24, 256  }
 0x18b   : > { %628 = vsyncadd (!%p494_p6), %s393_s24, 4294967040  ;;  %s17_s22 = sadd.s32 1, %s659_s22   ;;  %s853_s28 = sld [smem:[#allocation5_spill]] }
 0x18c   : > { %p14_p7 = scmp.ge.s32.totalorder %s17_s22, 10   ;;  %s854_s13 = sld [smem:[#allocation6_spill]] }
 0x18d   : > { %s855_s15 = smov %s635_s16  ;;  %s856_s16 = smov %s639_s17 }
 0x18e   : > { %s857_s17 = smov %s759_s7  ;;  %s858_s18 = smov %s651_s20 }
 0x18f   : > { %s859_s19 = smov %s655_s21  ;;  %16 = sbr.rel (!%p14_p7) target bundleno = 5 (0x5), region = 71 }
 0x191   : > { %s860_s20 = smov %s853_s28 }
 0x192   : > { %s861_s21 = smov %s854_s13 }
 0x196   :  { %398 = vsyncpa [#allocation3], 1 }
 0x197   :  { %400 = vsyncpa [#allocation3 + $0x1], 1 }

</bundles_post_ra>
